<compile_context>
chip_gen: v6e
topology: v6e:2x2x1
jax: 0.10.0
libtpu: 0.0.40
codegen_flags: <defaults>
</compile_context>

<pallas_src>
import functools

import jax
import jax.numpy as jnp
from jax.experimental import pallas as pl
from jax.experimental.pallas import tpu as pltpu

LANES = 128
SUBLANES = 8


def _elastic_net_kernel(w_ref, out_ref, acc_ref, *, l1_ratio, scale, numel, needs_mask):
    c = pl.program_id(0)
    i = pl.program_id(1)

    @pl.when(i == 0)
    def _():
        acc_ref[...] = jnp.zeros_like(acc_ref)

    tile_rows, lanes = w_ref.shape
    c1 = jnp.float32(l1_ratio)
    c2 = jnp.float32(0.5 * (1.0 - l1_ratio))

    def accum(w_f32):
        a = jnp.abs(w_f32)
        # w*w == |w|*|w|  ->  acc += |w| * (c1 + c2*|w|): 5 VALU ops/elem.
        acc_ref[...] += a * (c1 + c2 * a)

    if needs_mask:
        block_elems = tile_rows * lanes
        blk = c * pl.num_programs(1) + i            # logical block index
        block_start = blk * block_elems
        block_end = block_start + block_elems

        @pl.when(block_end <= numel)
        def _():                                    # fully in-range: no mask cost
            accum(w_ref[...].astype(jnp.float32))

        @pl.when(block_end > numel)
        def _():                                    # boundary / overhang block
            rows = jax.lax.broadcasted_iota(jnp.int32, (tile_rows, lanes), 0)
            cols = jax.lax.broadcasted_iota(jnp.int32, (tile_rows, lanes), 1)
            idx = block_start + rows * lanes + cols
            # Zero w BEFORE |w| / w*w so garbage (NaN/Inf) cannot leak.
            w = jnp.where(idx < numel, w_ref[...].astype(jnp.float32), 0.0)
            accum(w)
    else:
        accum(w_ref[...].astype(jnp.float32))

    @pl.when(i == pl.num_programs(1) - 1)
    def _():
        # Fold (tile_rows,128) accumulator down to one lane-dense (8,128) block
        # (whole-vreg adds only), scale once by alpha/numel.
        folded = jnp.sum(
            acc_ref[...].reshape(tile_rows // SUBLANES, SUBLANES, LANES), axis=0
        )
        out_ref[...] = folded * jnp.float32(scale)


def _tensorcores_per_chip():
    """Best-effort TensorCores-per-chip: 2 on v7x, 1 on v5e/v6e (and unknown)."""
    try:
        kind = jax.devices()[0].device_kind.lower()
    except Exception:
        return 1
    return 2 if ("v7" in kind or "7x" in kind) else 1


def elastic_net_loss(weights, alpha=1.0, l1_ratio=0.5, *, tile_rows=None, num_cores=None):
    """alpha * (l1_ratio * sum|w| + (1 - l1_ratio) * 0.5 * sum w^2) / numel."""
    weights = jnp.asarray(weights)
    numel = int(weights.size)
    if numel == 0:
        return jnp.float32(float("nan"))            # matches 0/0 of the reference

    itemsize = int(jnp.dtype(weights.dtype).itemsize)
    sub_mult = max(SUBLANES, 32 // max(itemsize, 1))      # f32:8, bf16:16, int8:32
    if tile_rows is None:
        # ~512 KiB HBM block regardless of dtype (1024 f32 / 2048 bf16 / 4096 i8).
        tile_rows = (512 * 1024) // (LANES * itemsize)
    tile_rows = max(sub_mult, (int(tile_rows) // sub_mult) * sub_mult)

    if num_cores is None:
        num_cores = _tensorcores_per_chip()
    num_cores = max(1, int(num_cores))

    rows = pl.cdiv(numel, LANES)
    flat = weights.reshape(-1)                       # contiguous reshape: no copy

    if rows <= tile_rows:
        # Tiny tensor: a single lane-dense block; pad (<= ~512 KiB copy) so it
        # tiles exactly.  Zero padding contributes 0 to both sums.
        tile_rows = max(sub_mult, pl.cdiv(rows, sub_mult) * sub_mult)
        padded_len = tile_rows * LANES
        if padded_len != numel:
            flat = jnp.pad(flat, (0, padded_len - numel))
        rows_arr, tiles, num_cores = tile_rows, 1, 1
    else:
        if numel % LANES != 0:
            # TODO(synk): large tensors whose size is not a multiple of 128 still
            # pay one pad copy (to the next lane multiple); could be removed by
            # summing the <=127-element tail on the JAX side instead.
            flat = jnp.pad(flat, (0, rows * LANES - numel))
        rows_arr = int(flat.size) // LANES
        tiles = pl.cdiv(rows_arr, tile_rows)
        num_cores = min(num_cores, tiles)

    steps_per_core = pl.cdiv(tiles, num_cores)
    total_blocks = num_cores * steps_per_core
    # Garbage (not zero padding) exists past the array's last row whenever the
    # logical grid covers more rows than the array holds -> mask in-kernel.
    needs_mask = bool(total_blocks * tile_rows > rows_arr)

    slab = flat.reshape(rows_arr, LANES)

    kernel = functools.partial(
        _elastic_net_kernel,
        l1_ratio=float(l1_ratio),
        scale=float(alpha) / float(numel),           # divisor = original numel
        numel=numel,
        needs_mask=needs_mask,
    )

    last_valid_block = tiles - 1

    def in_index_map(c, i):
        # Clamp so logical steps past the last real block (only possible when
        # tiles % num_cores != 0) re-read a valid block; the in-kernel mask
        # zeroes their entire contribution.
        return (jnp.minimum(c * steps_per_core + i, last_valid_block), 0)

    def build(dim_sem):
        return pl.pallas_call(
            kernel,
            out_shape=jax.ShapeDtypeStruct((num_cores * SUBLANES, LANES), jnp.float32),
            grid_spec=pltpu.PrefetchScalarGridSpec(
                num_scalar_prefetch=0,
                grid=(num_cores, steps_per_core),
                in_specs=[pl.BlockSpec((tile_rows, LANES), in_index_map)],
                out_specs=pl.BlockSpec((SUBLANES, LANES), lambda c, i: (c, 0)),
                scratch_shapes=[pltpu.VMEM((tile_rows, LANES), jnp.float32)],
            ),
            compiler_params=pltpu.CompilerParams(dimension_semantics=dim_sem),
        )

    semantics = []
    if num_cores > 1 and hasattr(pltpu, "CORE_PARALLEL"):
        # v7x: explicitly shard the leading axis over both TensorCores.
        semantics.append((pltpu.CORE_PARALLEL, pltpu.ARBITRARY))
    semantics.append(("parallel", "arbitrary"))

    out, err = None, None
    for dim_sem in semantics:
        try:
            out = build(dim_sem)(slab)
            break
        except Exception as e:          # fall back if CORE_PARALLEL is rejected
            err = e
    if out is None:
        raise err

    # Each per-core (8,128) block already carries alpha/numel; one tiny sum
    # (<= num_cores*1024 f32) finishes the reduction.
    return jnp.sum(out)


def elastic_net_loss_ref(weights, alpha=1.0, l1_ratio=0.5):
    w = jnp.asarray(weights).astype(jnp.float32)
    l1 = jnp.sum(jnp.abs(w))
    l2 = jnp.sum(w * w)
    div = jnp.float32(w.size)
    return alpha * (l1_ratio * l1 + (1.0 - l1_ratio) * 0.5 * l2) / div


if __name__ == "__main__":
    key = jax.random.PRNGKey(0)
    k0, k1, k2, k3 = jax.random.split(key, 4)

    alpha, l1_ratio = 1.0, 0.5

    tests = [
        # conv-like parameter tensor (primary shape from the module spec)
        jax.random.normal(k0, (2, 4, 16, 16), dtype=jnp.float32),
        # dense-like parameter tensor: multi-tile path, no padding, no mask
        jax.random.normal(k1, (256, 1024), dtype=jnp.float32),
        # multi-tile with a ragged last block: in-kernel mask path, no jnp.pad
        jax.random.normal(k3, (520, 256), dtype=jnp.float32),
        # ragged tiny size: single-block zero-pad path
        jax.random.normal(k2, (3, 5, 7), dtype=jnp.float32),
        # bf16 weights: native-dtype streaming, (16,128) packing, 2048-row tiles
        jax.random.normal(k0, (2, 4, 16, 16), dtype=jnp.float32).astype(jnp.bfloat16),
    ]

    for w in tests:
        loss = jax.block_until_ready(
            elastic_net_loss(w, alpha=alpha, l1_ratio=l1_ratio)
        )
        ref = jax.block_until_ready(
            elastic_net_loss_ref(w, alpha=alpha, l1_ratio=l1_ratio)
        )
        assert jnp.allclose(loss, ref, rtol=1e-4, atol=1e-6), (
            w.shape, str(w.dtype), loss, ref
        )

    print("KERNEL_OK")
</pallas_src>

<mosaic_0001>
module attributes {stable_mosaic.version = 11 : i64} {
  func.func @_elastic_net_kernel(%arg0: i32, %arg1: i32, %arg2: memref<16x128xf32, #tpu.memory_space<vmem>>, %arg3: memref<8x128xf32, #tpu.memory_space<vmem>>, %arg4: memref<16x128xf32, #tpu.memory_space<vmem>>) attributes {dimension_semantics = [#tpu.dimension_semantics<parallel>, #tpu.dimension_semantics<arbitrary>], iteration_bounds = array<i64: 1, 1>, scalar_prefetch = 0 : i64, scratch_operands = 1 : i64, tpu.core_type = #tpu.core_type<tc>, window_params = [{transform_indices = @transform_0, window_bounds = array<i64: 16, 128>}, {transform_indices = @transform_1, window_bounds = array<i64: 8, 128>}]} {
    %c0_i32 = arith.constant 0 : i32
    %0 = arith.cmpi eq, %arg1, %c0_i32 : i32
    %1 = arith.extui %0 : i1 to i32
    %c0_i32_0 = arith.constant 0 : i32
    %2 = arith.cmpi ne, %1, %c0_i32_0 : i32
    scf.if %2 {
      %cst_9 = arith.constant 0.000000e+00 : f32
      %16 = vector.broadcast %cst_9 : f32 to vector<16x128xf32>
      %c0_10 = arith.constant 0 : index
      %c0_11 = arith.constant 0 : index
      %17 = vector.load %arg4[%c0_10, %c0_11] : memref<16x128xf32, #tpu.memory_space<vmem>>, vector<16x128xf32>
      tpu.vector_store %arg4[%c0_10, %c0_11], %16 {strides = array<i32>} : memref<16x128xf32, #tpu.memory_space<vmem>>, vector<16x128xf32>,
    } else {
    }
    %c0 = arith.constant 0 : index
    %c0_1 = arith.constant 0 : index
    %3 = vector.load %arg2[%c0, %c0_1] : memref<16x128xf32, #tpu.memory_space<vmem>>, vector<16x128xf32>
    %4 = math.absf %3 : vector<16x128xf32>
    %c0_2 = arith.constant 0 : index
    %c0_3 = arith.constant 0 : index
    %5 = vector.load %arg4[%c0_2, %c0_3] : memref<16x128xf32, #tpu.memory_space<vmem>>, vector<16x128xf32>
    %cst = arith.constant 2.500000e-01 : f32
    %6 = vector.broadcast %cst : f32 to vector<16x128xf32>
    %7 = arith.mulf %6, %4 : vector<16x128xf32>
    %cst_4 = arith.constant 5.000000e-01 : f32
    %8 = vector.broadcast %cst_4 : f32 to vector<16x128xf32>
    %9 = arith.addf %8, %7 : vector<16x128xf32>
    %10 = arith.mulf %4, %9 : vector<16x128xf32>
    %11 = arith.addf %5, %10 : vector<16x128xf32>
    %c0_5 = arith.constant 0 : index
    %c0_6 = arith.constant 0 : index
    %12 = vector.load %arg4[%c0_5, %c0_6] : memref<16x128xf32, #tpu.memory_space<vmem>>, vector<16x128xf32>
    tpu.vector_store %arg4[%c0_5, %c0_6], %11 {strides = array<i32>} : memref<16x128xf32, #tpu.memory_space<vmem>>, vector<16x128xf32>,
    %c0_i32_7 = arith.constant 0 : i32
    %13 = arith.cmpi eq, %arg1, %c0_i32_7 : i32
    %14 = arith.extui %13 : i1 to i32
    %c0_i32_8 = arith.constant 0 : i32
    %15 = arith.cmpi ne, %14, %c0_i32_8 : i32
    scf.if %15 {
      %c0_9 = arith.constant 0 : index
      %c0_10 = arith.constant 0 : index
      %16 = vector.load %arg4[%c0_9, %c0_10] : memref<16x128xf32, #tpu.memory_space<vmem>>, vector<16x128xf32>
      %17 = vector.shape_cast %16 : vector<16x128xf32> to vector<2x8x128xf32>
      %cst_11 = arith.constant dense<0.000000e+00> : vector<8x128xf32>
      %18 = vector.multi_reduction <add>, %17, %cst_11 [0] : vector<2x8x128xf32> to vector<8x128xf32>
      %cst_12 = arith.constant 4.8828125E-4 : f32
      %19 = vector.broadcast %cst_12 : f32 to vector<8x128xf32>
      %20 = arith.mulf %18, %19 : vector<8x128xf32>
      %c0_13 = arith.constant 0 : index
      %c0_14 = arith.constant 0 : index
      %21 = vector.load %arg3[%c0_13, %c0_14] : memref<8x128xf32, #tpu.memory_space<vmem>>, vector<8x128xf32>
      tpu.vector_store %arg3[%c0_13, %c0_14], %20 {strides = array<i32>} : memref<8x128xf32, #tpu.memory_space<vmem>>, vector<8x128xf32>,
    } else {
    }
    return
  }
  func.func @transform_0(%arg0: i32, %arg1: i32) -> (i32, i32) {
    %c1_i32 = arith.constant 1 : i32
    %0 = arith.muli %arg0, %c1_i32 : i32
    %1 = arith.addi %0, %arg1 : i32
    %c0_i32 = arith.constant 0 : i32
    %2 = arith.minsi %1, %c0_i32 : i32
    %c0_i32_0 = arith.constant 0 : i32
    %c0_i32_1 = arith.constant 0 : i32
    return %2, %c0_i32_0 : i32, i32
  }
  func.func @transform_1(%arg0: i32, %arg1: i32) -> (i32, i32) {
    %c0_i32 = arith.constant 0 : i32
    %c0_i32_0 = arith.constant 0 : i32
    return %arg0, %c0_i32 : i32, i32
  }
}

</mosaic_0001>

<bundles_post_ra>
// kernel: tpu_custom_call.1
= control target key start
LH: loop header
LB: loop body
LE: loop exit
PB: predicated region body
PF: predicated region fallthrough
CT: control target
= control target key end

     0   :  { %6 = vsyncpa [#allocation4], 0  ;;  %s148_s0 = inlined_call_operand.hbm [shape: f32[16,128], index: 0, kind: input, shape index: {}]   ;;  %s149_s1 = inlined_call_operand.hbm [shape: f32[8,128], index: 1, kind: output, shape index: {}]  }
   0x1   :  { %7 = vsyncpa [#allocation5], 0  ;;  %s128_s6 = smov [#allocation3]  }
   0x2   :  { %s19_s7 = sshll.u32 %s128_s6, 4  ;;  %s20_s7 = int_to_ptr.vmem [resolvable:$true] %s19_s7 }
   0x3   :  { %s92_s8 = scalar_lea.vmem %s20_s7, 256  ;;  %p97_p1 = scmp.lt.s32.totalorder %s20_s7, %s20_s7 }
   0x4   :  { %p93_p0 = scmp.ne.s32.totalorder %s20_s7, %s92_s8  ;;  %p98_p2 = scmp.lt.s32.totalorder %s92_s8, %s92_s8 }
   0x6   :  { %p99_p3 = por %p98_p2, %p97_p1 }
   0x8   :  { %p100_p4 = pnand %p99_p3, %p93_p0 }
   0xa   :  { %103 = shalt.err (!%p100_p4)
}
   0xb   :  { %s129_s9 = smov 128   ;;  %s130_s10 = smov 8  }
   0xc   :  { %25 = dma.hbm_to_vmem [thread:$0]  %s148_s0, 256, %s20_s7, [#allocation4], %s129_s9, %s129_s9, %s130_s10  }
   0xd   :  { %124 = dma.done.wait [#allocation4], 256  }
   0xe   :  { %125 = vsyncadd [#allocation4], 4294967040  ;;  %v39_v0 = vld [vmem:[#allocation3] sm:$0xff]  ;;  %v40_v1 = vld [vmem:[#allocation3 + $0x8] sm:$0xff]  ;;  %s131_s13 = smov [#allocation6]  }
   0xf   :  { %v41_v2 = vand.u32 2147483647, %v39_v0  ;;  %v42_v3 = vand.u32 2147483647, %v40_v1  ;;  %s69_s14 = sshll.u32 %s131_s13, 4  ;;  %s70_s14 = int_to_ptr.vmem [resolvable:$true] %s69_s14 }
  0x10   :  { %s104_s15 = scalar_lea.vmem %s70_s14, 128  ;;  %p109_p6 = scmp.lt.s32.totalorder %s70_s14, %s70_s14 }
  0x11   :  { %v45_v4 = vmul.f32 0.25, %v41_v2  ;;  %v46_v5 = vmul.f32 0.25, %v42_v3  ;;  %p105_p5 = scmp.ne.s32.totalorder %s70_s14, %s104_s15  ;;  %p110_p7 = scmp.lt.s32.totalorder %s104_s15, %s104_s15 }
  0x13   :  { %v47_v6 = vadd.f32 0.5, %v45_v4  ;;  %v48_v7 = vadd.f32 0.5, %v46_v5  ;;  %p111_p8 = por %p110_p7, %p109_p6 }
  0x15   :  { %v49_v8 = vmul.f32 %v47_v6, %v41_v2  ;;  %v50_v9 = vmul.f32 %v48_v7, %v42_v3  ;;  %p112_p9 = pnand %p111_p8, %p105_p5 }
  0x17   :  { %v60_v10 = vadd.f32 %v50_v9, %v49_v8 }
  0x19   :  { %v61_v11 = vmul.f32 0.00048828125, %v60_v10 }
  0x1b   :  { %62 = vst [vmem:[#allocation6] sm:$0xff] %v61_v11 }
  0x1c   :  { %115 = shalt.err (!%p112_p9)
}
  0x1d   :  { %72 = dma.vmem_to_hbm [thread:$0]  %s70_s14, 128, %s149_s1, [#allocation5]  }
  0x1e   :  { %126 = dma.done.wait [#allocation5], 128  }
  0x1f   :  { %127 = vsyncadd [#allocation5], 4294967168 }
  0x20   :  { %76 = vsyncpa [#allocation4], 1 }
  0x21   :  { %77 = vsyncpa [#allocation5], 1 }

</bundles_post_ra>
